<compile_context>
chip_gen: v6e
topology: v6e:2x2x1
jax: 0.10.0
libtpu: 0.0.40
codegen_flags: <defaults>
</compile_context>

<pallas_src>
import functools

import jax
import jax.numpy as jnp
from jax import lax
from jax.experimental import pallas as pl
from jax.experimental.pallas import tpu as pltpu

_INV_SQRT2 = 0.7071067811865476
_SUBLANE = 8


def _round_up(x, m):
    return (x + m - 1) // m * m


def _gelu(h, approx):
    if approx:
        # tanh approximation -> EUP (frees VALU slots); not bit-identical to
        # nn.GELU()'s exact erf, so it is opt-in.
        return jax.nn.gelu(h, approximate=True)
    return 0.5 * h * (1.0 + lax.erf(h * _INV_SQRT2))


def _vmem_limits():
    """Per-generation VMEM limit + tile-selection budget (with headroom)."""
    try:
        cap = int(pltpu.get_tpu_info().vmem_capacity_bytes)
    except Exception:  # conservative fallback if the query is unavailable
        cap = 64 * 1024 * 1024
    if cap <= 64 * 1024 * 1024:          # v7x-class TensorCore (64 MiB)
        limit = 48 * 1024 * 1024
    else:                                # v5e / v6e (128 MiB)
        limit = 64 * 1024 * 1024
    budget = limit * 3 // 4              # leave headroom for Mosaic scratch
    return limit, budget


def _working_set_bytes(tm, tn, cin, x_bytes, io_bytes, tiled):
    # Pallas double-buffers every pipelined block.
    dma = 2 * (tm * cin * x_bytes            # x rows
               + 2 * tm * tn * io_bytes      # fn(x) in + output
               + cin * tn * 2                # bf16 weight tile
               + 2 * cin * 4 + tn * 4)       # BN scale/shift + bias
    # f32 intermediates materialised in-kernel (x_f32 / h / g, the bf16 cast
    # of g) plus the f32 matmul accumulator.
    interm = tm * cin * (4 + 4 + 2) + tm * tn * 4
    scratch = tm * cin * 2 if tiled else 0   # BN+GELU cache (tiled path)
    return dma + interm + scratch


def _select_tiles(M, Cin, Cout, x_bytes, io_bytes, budget, tm_hint, force_tn):
    tm0 = tm_hint if tm_hint is not None else 1024
    tm0 = max(_SUBLANE, _round_up(min(tm0, _round_up(M, _SUBLANE)), _SUBLANE))

    def shrink(tm, tn, tiled):
        while tm > 128 and _working_set_bytes(
                tm, tn, Cin, x_bytes, io_bytes, tiled) > budget:
            tm = max(128, _round_up(tm // 2, _SUBLANE))
        return tm

    if force_tn is not None and Cout % int(force_tn) == 0 and force_tn < Cout:
        tn, tiled = int(force_tn), True                  # test / debug hook
        tm = shrink(tm0, tn, tiled=True)
    else:
        # Preferred: single output-channel tile -> BN+GELU computed once per
        # row tile, x read once, no recompute across channel tiles.
        tm = shrink(tm0, Cout, tiled=False)
        tn, tiled = Cout, False
        if (_working_set_bytes(tm, Cout, Cin, x_bytes, io_bytes, False)
                > budget and Cout % 128 == 0 and Cout > 256):
            # Very large Cout: tile it and cache BN+GELU in a VMEM scratch.
            tn = 256 if Cout % 256 == 0 else 128
            tiled = True
            tm = shrink(tm0, tn, tiled=True)
        # TODO(synk): a huge Cout that is not a multiple of 128 stays
        # single-tile (may overshoot the budget); pad Cout if it ever matters.

    # Let multi-TensorCore chips (v7x) split the row ("parallel") axis: make
    # sure it has >= 2 steps whenever there is enough work.
    while tm > 128 and pl.cdiv(M, tm) < 2:
        tm = max(128, _round_up(tm // 2, _SUBLANE))
    return tm, tn, tiled


# ----------------------------- kernels --------------------------------------


def _shortcut_residual_kernel(x_ref, fn_ref, scale_ref, shift_ref, w_ref,
                              b_ref, o_ref, *, approx_gelu):
    """Single output-channel tile: BN + GELU + 1x1 conv + residual add."""
    x = x_ref[...].astype(jnp.float32)
    h = x * scale_ref[...] + shift_ref[...]             # folded BatchNorm2d
    g = _gelu(h, approx_gelu)
    y = jnp.dot(g.astype(w_ref.dtype), w_ref[...],      # 1x1 conv on the MXU
                preferred_element_type=jnp.float32)
    o_ref[...] = (y + b_ref[...] + fn_ref[...].astype(jnp.float32)
                  ).astype(o_ref.dtype)


def _shortcut_residual_kernel_tiled(x_ref, fn_ref, scale_ref, shift_ref,
                                    w_ref, b_ref, o_ref, g_ref, *,
                                    approx_gelu):
    """Cout tiled: BN+GELU computed once per row tile (j == 0) into scratch."""
    @pl.when(pl.program_id(1) == 0)
    def _():
        x = x_ref[...].astype(jnp.float32)
        h = x * scale_ref[...] + shift_ref[...]
        g_ref[...] = _gelu(h, approx_gelu).astype(g_ref.dtype)

    y = jnp.dot(g_ref[...], w_ref[...], preferred_element_type=jnp.float32)
    o_ref[...] = (y + b_ref[...] + fn_ref[...].astype(jnp.float32)
                  ).astype(o_ref.dtype)


# ----------------------------- wrappers -------------------------------------


def fold_shortcut_params(gamma, beta, run_mean, run_var, conv_w, conv_b,
                         eps=1e-5):
    """One-time prep: fold inference BatchNorm into a per-channel scale/shift
    and format the 1x1-conv weight for the MXU.  Hoist out of the hot path."""
    scale = gamma.astype(jnp.float32) * lax.rsqrt(
        run_var.astype(jnp.float32) + eps)
    shift = beta.astype(jnp.float32) - run_mean.astype(jnp.float32) * scale
    cout, cin = conv_w.shape[0], conv_w.shape[1]
    w_t = conv_w.reshape(cout, cin).T.astype(jnp.bfloat16)    # (Cin, Cout)
    bias = conv_b.astype(jnp.float32).reshape(1, cout)
    return scale.reshape(1, cin), shift.reshape(1, cin), w_t, bias


@functools.partial(jax.jit, donate_argnums=(1,),
                   static_argnames=("tm", "approx_gelu", "force_tn"))
def mbconv_residual_folded_nhwc(x, fn_out, scale, shift, w_t, bias, *,
                                tm=None, approx_gelu=False, force_tn=None):
    """Fast path.  x: (N,H,W,Cin), fn_out: (N,H,W,Cout) -> (N,H,W,Cout).

    fn_out is DONATED: its HBM buffer backs the output (input_output_aliases
    + jit donation), so callers must not reuse it afterwards.
    """
    N, H, W, Cin = x.shape
    Cout = w_t.shape[1]
    M = N * H * W
    out_dtype = fn_out.dtype            # output aliases fn_out's buffer

    x_bytes = jnp.dtype(x.dtype).itemsize
    io_bytes = jnp.dtype(out_dtype).itemsize
    vmem_limit, budget = _vmem_limits()
    tm, tn, tiled = _select_tiles(M, Cin, Cout, x_bytes, io_bytes, budget,
                                  tm, force_tn)

    # (N,H,W,C) -> (M,C) is a pure reshape: no pad, no transpose, no HBM copy.
    x_flat = x.reshape(M, Cin)
    f_flat = fn_out.reshape(M, Cout)

    n_rows = pl.cdiv(M, tm)             # ragged last row tile handled by Pallas

    if not tiled:
        grid = (n_rows,)
        in_specs = [
            pl.BlockSpec((tm, Cin), lambda i: (i, 0)),     # x rows
            pl.BlockSpec((tm, Cout), lambda i: (i, 0)),    # fn(x) rows
            pl.BlockSpec((1, Cin), lambda i: (0, 0)),      # BN scale
            pl.BlockSpec((1, Cin), lambda i: (0, 0)),      # BN shift
            pl.BlockSpec((Cin, Cout), lambda i: (0, 0)),   # conv W^T (bf16)
            pl.BlockSpec((1, Cout), lambda i: (0, 0)),     # conv bias
        ]
        out_spec = pl.BlockSpec((tm, Cout), lambda i: (i, 0))
        scratch_shapes = []
        dim_sem = ("parallel",)
        kernel = functools.partial(_shortcut_residual_kernel,
                                   approx_gelu=approx_gelu)
    else:
        grid = (n_rows, Cout // tn)     # channel-tile axis j innermost
        in_specs = [
            pl.BlockSpec((tm, Cin), lambda i, j: (i, 0)),  # x DMA'd once per i
            pl.BlockSpec((tm, tn), lambda i, j: (i, j)),
            pl.BlockSpec((1, Cin), lambda i, j: (0, 0)),
            pl.BlockSpec((1, Cin), lambda i, j: (0, 0)),
            pl.BlockSpec((Cin, tn), lambda i, j: (0, j)),
            pl.BlockSpec((1, tn), lambda i, j: (0, j)),
        ]
        out_spec = pl.BlockSpec((tm, tn), lambda i, j: (i, j))
        scratch_shapes = [pltpu.VMEM((tm, Cin), jnp.bfloat16)]  # BN+GELU cache
        # Only the row axis is sharded across cores (j must stay sequential
        # per row tile so the scratch fill/reuse pattern holds, and splitting
        # j would make both cores re-read the same x rows).
        dim_sem = ("parallel", "arbitrary")
        kernel = functools.partial(_shortcut_residual_kernel_tiled,
                                   approx_gelu=approx_gelu)

    out_flat = pl.pallas_call(
        kernel,
        out_shape=jax.ShapeDtypeStruct((M, Cout), out_dtype),
        grid_spec=pltpu.PrefetchScalarGridSpec(
            num_scalar_prefetch=0,
            grid=grid,
            in_specs=in_specs,
            out_specs=out_spec,
            scratch_shapes=scratch_shapes),
        input_output_aliases={1: 0},    # fn(x) buffer becomes the output
        compiler_params=pltpu.CompilerParams(
            dimension_semantics=dim_sem,
            vmem_limit_bytes=vmem_limit),
    )(x_flat, f_flat, scale, shift, w_t, bias)

    return out_flat.reshape(N, H, W, Cout)


def mbconv_residual_nhwc(x, fn_out, gamma, beta, run_mean, run_var, conv_w,
                         conv_b, *, eps=1e-5, tm=None, approx_gelu=False,
                         force_tn=None):
    """Convenience entry (folds the BN/conv params on every call).

    For repeated forward passes call fold_shortcut_params() once and use
    mbconv_residual_folded_nhwc directly.  NOTE: fn_out is donated.
    """
    folded = fold_shortcut_params(gamma, beta, run_mean, run_var, conv_w,
                                  conv_b, eps=eps)
    return mbconv_residual_folded_nhwc(x, fn_out, *folded, tm=tm,
                                       approx_gelu=approx_gelu,
                                       force_tn=force_tn)


def mbconv_residual_nchw(x, fn_out, gamma, beta, run_mean, run_var, conv_w,
                         conv_b, *, eps=1e-5, tm=None, approx_gelu=False):
    """PyTorch-layout adapter: (N,C,H,W) in/out.  Pays for two full-tensor
    transposes around the kernel; prefer the NHWC entry points when the
    surrounding model is (or can be kept) channels-last."""
    x_nhwc = jnp.transpose(x, (0, 2, 3, 1))
    f_nhwc = jnp.transpose(fn_out, (0, 2, 3, 1))
    out = mbconv_residual_nhwc(x_nhwc, f_nhwc, gamma, beta, run_mean, run_var,
                               conv_w, conv_b, eps=eps, tm=tm,
                               approx_gelu=approx_gelu)
    return jnp.transpose(out, (0, 3, 1, 2))


# ----------------------------- reference ------------------------------------


def _reference_nhwc(x, fn_out, gamma, beta, run_mean, run_var, conv_w, conv_b,
                    eps=1e-5):
    """Pure-JAX f32 reference of the shortcut + residual add (NHWC)."""
    scale = gamma * lax.rsqrt(run_var + eps)
    shift = beta - run_mean * scale
    h = x * scale + shift
    g = 0.5 * h * (1.0 + lax.erf(h * _INV_SQRT2))
    w2 = conv_w.reshape(conv_w.shape[0], conv_w.shape[1])     # (Cout, Cin)
    res = jnp.einsum("nhwc,oc->nhwo", g, w2) + conv_b
    return fn_out + res


if __name__ == "__main__":
    key = jax.random.PRNGKey(0)
    (k_x, k_g, k_b, k_m, k_v, k_w, k_cb,
     k_x2, k_f2, k_w2, k_cb2) = jax.random.split(key, 11)

    # ---- Test 1: module-sized shapes; NCHW adapter + NHWC fast path --------
    N, C, H, W = 2, 4, 16, 16               # dim_in == dim_out == 4
    dim_in = dim_out = C

    x = jax.random.normal(k_x, (N, dim_in, H, W), dtype=jnp.float32)
    gamma = 1.0 + 0.1 * jax.random.normal(k_g, (dim_in,), dtype=jnp.float32)
    beta = 0.1 * jax.random.normal(k_b, (dim_in,), dtype=jnp.float32)
    run_mean = 0.05 * jax.random.normal(k_m, (dim_in,), dtype=jnp.float32)
    run_var = jnp.abs(1.0 + 0.1 * jax.random.normal(k_v, (dim_in,),
                                                    dtype=jnp.float32))
    conv_w = 0.2 * jax.random.normal(k_w, (dim_out, dim_in, 1, 1),
                                     dtype=jnp.float32)
    conv_b = 0.05 * jax.random.normal(k_cb, (dim_out,), dtype=jnp.float32)

    fn_out = x                               # fn == identity placeholder
    x_nhwc = jnp.transpose(x, (0, 2, 3, 1))
    f_nhwc_ref = jnp.transpose(fn_out, (0, 2, 3, 1))
    ref_nhwc = _reference_nhwc(x_nhwc, f_nhwc_ref, gamma, beta, run_mean,
                               run_var, conv_w, conv_b)

    # 1a) NCHW adapter (matches the PyTorch module's layout).
    out_nchw = mbconv_residual_nchw(x, fn_out, gamma, beta, run_mean, run_var,
                                    conv_w, conv_b)
    out_nchw = jax.block_until_ready(out_nchw)
    assert out_nchw.shape == (N, dim_out, H, W)
    # bf16 MXU operands (f32 accumulate) -> relaxed tolerance vs exact f32.
    assert jnp.allclose(out_nchw, jnp.transpose(ref_nhwc, (0, 3, 1, 2)),
                        atol=3e-2, rtol=3e-2), "NCHW path mismatch"

    # 1b) NHWC fast path with hoisted (pre-folded) params; fn_out donated.
    folded = fold_shortcut_params(gamma, beta, run_mean, run_var,
                                  conv_w, conv_b)
    f_nhwc_don = jnp.transpose(fn_out, (0, 2, 3, 1))   # fresh buffer to donate
    out_nhwc = mbconv_residual_folded_nhwc(x_nhwc, f_nhwc_don, *folded)
    out_nhwc = jax.block_until_ready(out_nhwc)
    assert out_nhwc.shape == (N, H, W, dim_out)
    assert jnp.allclose(out_nhwc, ref_nhwc, atol=3e-2, rtol=3e-2), \
        "NHWC path mismatch"

    # ---- Test 2: exercise the Cout-tiled (VMEM-scratch) path at small scale
    N2, H2, W2, C2 = 1, 8, 8, 256
    x2 = jax.random.normal(k_x2, (N2, H2, W2, C2), dtype=jnp.float32)
    f2 = jax.random.normal(k_f2, (N2, H2, W2, C2), dtype=jnp.float32)
    g2 = jnp.ones((C2,), jnp.float32)
    b2 = jnp.zeros((C2,), jnp.float32)
    m2 = jnp.zeros((C2,), jnp.float32)
    v2 = jnp.ones((C2,), jnp.float32)
    w2 = 0.05 * jax.random.normal(k_w2, (C2, C2, 1, 1), dtype=jnp.float32)
    cb2 = 0.05 * jax.random.normal(k_cb2, (C2,), dtype=jnp.float32)

    ref2 = _reference_nhwc(x2, f2, g2, b2, m2, v2, w2, cb2)   # before donation
    out2 = mbconv_residual_nhwc(x2, f2, g2, b2, m2, v2, w2, cb2,
                                force_tn=128)        # forces 2 channel tiles
    out2 = jax.block_until_ready(out2)
    assert out2.shape == (N2, H2, W2, C2)
    assert jnp.allclose(out2, ref2, atol=5e-2, rtol=5e-2), \
        "Cout-tiled (scratch) path mismatch"

    print("KERNEL_OK")
</pallas_src>

<mosaic_0001>
module attributes {stable_mosaic.version = 11 : i64} {
  func.func @_shortcut_residual_kernel(%arg0: i32, %arg1: memref<256x4xf32, #tpu.memory_space<vmem>>, %arg2: memref<256x4xf32, #tpu.memory_space<vmem>>, %arg3: memref<1x4xf32, #tpu.memory_space<vmem>>, %arg4: memref<1x4xf32, #tpu.memory_space<vmem>>, %arg5: memref<4x4xbf16, #tpu.memory_space<vmem>>, %arg6: memref<1x4xf32, #tpu.memory_space<vmem>>, %arg7: memref<256x4xf32, #tpu.memory_space<vmem>>) attributes {dimension_semantics = [#tpu.dimension_semantics<parallel>], iteration_bounds = array<i64: 2>, scalar_prefetch = 0 : i64, scratch_operands = 0 : i64, tpu.core_type = #tpu.core_type<tc>, window_params = [{transform_indices = @transform_0, window_bounds = array<i64: 256, 4>}, {transform_indices = @transform_1, window_bounds = array<i64: 256, 4>}, {pipeline_mode = #tpu.pipeline_mode<synchronous>, transform_indices = @transform_2, window_bounds = array<i64: 1, 4>}, {pipeline_mode = #tpu.pipeline_mode<synchronous>, transform_indices = @transform_3, window_bounds = array<i64: 1, 4>}, {pipeline_mode = #tpu.pipeline_mode<synchronous>, transform_indices = @transform_4, window_bounds = array<i64: 4, 4>}, {pipeline_mode = #tpu.pipeline_mode<synchronous>, transform_indices = @transform_5, window_bounds = array<i64: 1, 4>}, {transform_indices = @transform_6, window_bounds = array<i64: 256, 4>}]} {
    %c0 = arith.constant 0 : index
    %c0_0 = arith.constant 0 : index
    %0 = vector.load %arg1[%c0, %c0_0] : memref<256x4xf32, #tpu.memory_space<vmem>>, vector<256x4xf32>
    %c0_1 = arith.constant 0 : index
    %c0_2 = arith.constant 0 : index
    %1 = vector.load %arg3[%c0_1, %c0_2] : memref<1x4xf32, #tpu.memory_space<vmem>>, vector<1x4xf32>
    %2 = vector.broadcast %1 : vector<1x4xf32> to vector<256x4xf32>
    %3 = arith.mulf %0, %2 : vector<256x4xf32>
    %c0_3 = arith.constant 0 : index
    %c0_4 = arith.constant 0 : index
    %4 = vector.load %arg4[%c0_3, %c0_4] : memref<1x4xf32, #tpu.memory_space<vmem>>, vector<1x4xf32>
    %5 = vector.broadcast %4 : vector<1x4xf32> to vector<256x4xf32>
    %6 = arith.addf %3, %5 : vector<256x4xf32>
    %cst = arith.constant 5.000000e-01 : f32
    %7 = vector.broadcast %cst : f32 to vector<256x4xf32>
    %8 = arith.mulf %7, %6 : vector<256x4xf32>
    %cst_5 = arith.constant 0.707106769 : f32
    %9 = vector.broadcast %cst_5 : f32 to vector<256x4xf32>
    %10 = arith.mulf %6, %9 : vector<256x4xf32>
    %11 = math.erf %10 : vector<256x4xf32>
    %cst_6 = arith.constant 1.000000e+00 : f32
    %12 = vector.broadcast %cst_6 : f32 to vector<256x4xf32>
    %13 = arith.addf %12, %11 : vector<256x4xf32>
    %14 = arith.mulf %8, %13 : vector<256x4xf32>
    %15 = arith.truncf %14 : vector<256x4xf32> to vector<256x4xbf16>
    %c0_7 = arith.constant 0 : index
    %c0_8 = arith.constant 0 : index
    %16 = vector.load %arg5[%c0_7, %c0_8] : memref<4x4xbf16, #tpu.memory_space<vmem>>, vector<4x4xbf16>
    %cst_9 = arith.constant dense<0.000000e+00> : vector<256x4xf32>
    %17 = tpu.matmul %15, %16, %cst_9 {dimension_numbers = #tpu.dot_dimension_numbers<[1], [0], [0], [1], [0, 0, 1, 1], [], []>} : vector<256x4xbf16>, vector<4x4xbf16>, vector<256x4xf32> -> vector<256x4xf32>
    %c0_10 = arith.constant 0 : index
    %c0_11 = arith.constant 0 : index
    %18 = vector.load %arg6[%c0_10, %c0_11] : memref<1x4xf32, #tpu.memory_space<vmem>>, vector<1x4xf32>
    %19 = vector.broadcast %18 : vector<1x4xf32> to vector<256x4xf32>
    %20 = arith.addf %17, %19 : vector<256x4xf32>
    %c0_12 = arith.constant 0 : index
    %c0_13 = arith.constant 0 : index
    %21 = vector.load %arg2[%c0_12, %c0_13] : memref<256x4xf32, #tpu.memory_space<vmem>>, vector<256x4xf32>
    %22 = arith.addf %20, %21 : vector<256x4xf32>
    %c0_14 = arith.constant 0 : index
    %c0_15 = arith.constant 0 : index
    %23 = vector.load %arg7[%c0_14, %c0_15] : memref<256x4xf32, #tpu.memory_space<vmem>>, vector<256x4xf32>
    tpu.vector_store %arg7[%c0_14, %c0_15], %22 {strides = array<i32>} : memref<256x4xf32, #tpu.memory_space<vmem>>, vector<256x4xf32>,
    return
  }
  func.func @transform_0(%arg0: i32) -> (i32, i32) {
    %c0_i32 = arith.constant 0 : i32
    %c0_i32_0 = arith.constant 0 : i32
    return %arg0, %c0_i32 : i32, i32
  }
  func.func @transform_1(%arg0: i32) -> (i32, i32) {
    %c0_i32 = arith.constant 0 : i32
    %c0_i32_0 = arith.constant 0 : i32
    return %arg0, %c0_i32 : i32, i32
  }
  func.func @transform_2(%arg0: i32) -> (i32, i32) {
    %c0_i32 = arith.constant 0 : i32
    %c0_i32_0 = arith.constant 0 : i32
    %c0_i32_1 = arith.constant 0 : i32
    return %c0_i32, %c0_i32_0 : i32, i32
  }
  func.func @transform_3(%arg0: i32) -> (i32, i32) {
    %c0_i32 = arith.constant 0 : i32
    %c0_i32_0 = arith.constant 0 : i32
    %c0_i32_1 = arith.constant 0 : i32
    return %c0_i32, %c0_i32_0 : i32, i32
  }
  func.func @transform_4(%arg0: i32) -> (i32, i32) {
    %c0_i32 = arith.constant 0 : i32
    %c0_i32_0 = arith.constant 0 : i32
    %c0_i32_1 = arith.constant 0 : i32
    return %c0_i32, %c0_i32_0 : i32, i32
  }
  func.func @transform_5(%arg0: i32) -> (i32, i32) {
    %c0_i32 = arith.constant 0 : i32
    %c0_i32_0 = arith.constant 0 : i32
    %c0_i32_1 = arith.constant 0 : i32
    return %c0_i32, %c0_i32_0 : i32, i32
  }
  func.func @transform_6(%arg0: i32) -> (i32, i32) {
    %c0_i32 = arith.constant 0 : i32
    %c0_i32_0 = arith.constant 0 : i32
    return %arg0, %c0_i32 : i32, i32
  }
}

</mosaic_0001>

<bundles_post_ra>
// kernel: mbconv_residual_folded_nhwc.1
= control target key start
LH: loop header
LB: loop body
LE: loop exit
PB: predicated region body
PF: predicated region fallthrough
CT: control target
= control target key end

     0   :  { %s1152_s21 = smov 0   ;;  %s1586_s0 = inlined_call_operand.vmem [shape: f32[512,4], index: 0, kind: input, shape index: {}]   ;;  %s1587_s1 = inlined_call_operand.vmem [shape: f32[512,4], index: 1, kind: input, shape index: {}, may-alias: {1,6}]   ;;  %s1588_s2 = inlined_call_operand.vmem [shape: f32[1,4], index: 2, kind: input, shape index: {}]   ;;  %s1589_s3 = inlined_call_operand.vmem [shape: f32[1,4], index: 3, kind: input, shape index: {}]   ;;  %s1590_s4 = inlined_call_operand.vmem [shape: bf16[4,4], index: 4, kind: input, shape index: {}]   ;;  %s1591_s5 = inlined_call_operand.vmem [shape: f32[1,4], index: 5, kind: input, shape index: {}]   ;;  %s1592_s6 = inlined_call_operand.vmem [shape: f32[512,4], index: 6, kind: output, shape index: {}, may-alias: {1,6}]  }
   0x1 LB: > { %s950_s22 = sadd.s32 4294967295, %s1115_s21   ;;  %p954_p0 = scmp.ge.s32.totalorder %s1115_s21, 1  ;;  %s1115_s21 = sphi %s1152_s21, %s16_s21  }
   0x2   : > { %p224_p1 = scmp.lt.s32.totalorder %s1115_s21, 3 }
   0x4   : > { %p225_p2 = pnand %p954_p0, %p224_p1 }
   0x5   : > { %s955_s25 = sshll.u32 (!%p225_p2), %s950_s22, 5 }
   0x6   : > { %228 = sbr.rel (%p225_p2) target bundleno = 292 (0x124), region = 44  ;;  %p260_p3 = scmp.lt.s32.totalorder (!%p225_p2), %s955_s25, 63 }
   0xb   : > { %v564_v0 = vld [vmem:[%s1590_s4] sm:$0x3]  ;;  %vm621_vm0 = vcmask 1041408   ;;  %s1594_s25 = smov (!%p260_p3, %s955_s25), 63  ;;  %vm572_vm1 = vcmask 31744  }
   0xc   : > { %1035 = vmatprep.subr.msk.bf16.mxu0 %vm621_vm0, %v564_v0  ;;  %1036 = vmatprep.subr.msk.bf16.mxu1 %vm621_vm0, %v564_v0  ;;  %v623_v1 = vsel %vm621_vm0, %v564_v0, 0  ;;  %s1163_s26 = sshll.u32 %s1594_s25, 3  ;;  %v1168_v2 = vld [vmem:[%s1588_s2] ss:$0 sm:$0xff] }
   0xd   : > { %1000 = vmatpush3.bf16.msra.mxu0 %v623_v1  ;;  %1034 = vmatpush3.bf16.msra.mxu1 %v623_v1  ;;  %s1174_s7 = scalar_lea.vmem %s1586_s0, %s1163_s26  ;;  %v1179_v3 = vld [vmem:[%s1589_s3] ss:$0 sm:$0xff]  ;;  %s1376_s12 = scalar_lea.vmem %s1587_s1, %s1163_s26 }
   0xe   : > { %v278_v4 = vld [vmem:[%s1174_s7] sm:$0xff]  ;;  %v279_v5 = vld [vmem:[%s1174_s7 + $0x8] sm:$0xff]  ;;  %v280_v11 = vld [vmem:[%s1174_s7 + $0x10] sm:$0xff]  ;;  %s1455_s17 = scalar_lea.vmem %s1592_s6, %s1163_s26 }
   0xf   : > { %v294_v6 = vld [vmem:[%s1174_s7 + $0x80] sm:$0xff]  ;;  %v317_v7 = vmul.f32 %v1168_v2, %v278_v4  ;;  %v318_v8 = vmul.f32 %v1168_v2, %v279_v5  ;;  %v295_v9 = vld [vmem:[%s1174_s7 + $0x88] sm:$0xff]  ;;  %v281_v12 = vld [vmem:[%s1174_s7 + $0x18] sm:$0xff]  ;;  %v319_v14 = vmul.f32 %v1168_v2, %v280_v11 }
  0x10   : > { %v333_v10 = vmul.f32 %v1168_v2, %v294_v6  ;;  %v334_v13 = vmul.f32 %v1168_v2, %v295_v9  ;;  %v320_v15 = vmul.f32 %v1168_v2, %v281_v12  ;;  %v296_v16 = vld [vmem:[%s1174_s7 + $0x90] sm:$0xff]  ;;  %v297_v17 = vld [vmem:[%s1174_s7 + $0x98] sm:$0xff]  ;;  %v282_v28 = vld [vmem:[%s1174_s7 + $0x20] sm:$0xff] }
  0x11   : > { %v356_v18 = vadd.f32 %v1179_v3, %v317_v7  ;;  %v357_v19 = vadd.f32 %v1179_v3, %v318_v8  ;;  %v335_v21 = vmul.f32 %v1168_v2, %v296_v16  ;;  %v358_v23 = vadd.f32 %v1179_v3, %v319_v14  ;;  %v283_v31 = vld [vmem:[%s1174_s7 + $0x28] sm:$0xff]  ;;  %v298_v32 = vld [vmem:[%s1174_s7 + $0xa0] sm:$0xff]  ;;  %v284_v42 = vld [vmem:[%s1174_s7 + $0x30] sm:$0xff] }
  0x12   : > { %v372_v20 = vadd.f32 %v1179_v3, %v333_v10  ;;  %v373_v22 = vadd.f32 %v1179_v3, %v334_v13  ;;  %v359_v24 = vadd.f32 %v1179_v3, %v320_v15  ;;  %v336_v25 = vmul.f32 %v1168_v2, %v297_v17  ;;  %v299_v40 = vld [vmem:[%s1174_s7 + $0xa8] sm:$0xff]  ;;  %v285_v51 = vld [vmem:[%s1174_s7 + $0x38] sm:$0xff]  ;;  %v300_v56 = vld [vmem:[%s1174_s7 + $0xb0] sm:$0xff] }
  0x13   : > { %v420_v26 = vmul.f32 0.70710677, %v356_v18  ;;  %v421_v27 = vmul.f32 0.70710677, %v357_v19  ;;  %v1206_v33 = vmul.f32 0.5, %v356_v18  ;;  %v374_v36 = vadd.f32 %v1179_v3, %v335_v21  ;;  %v301_v63 = vld [vmem:[%s1174_s7 + $0xb8] sm:$0xff] }
  0x14   : > { %v436_v29 = vmul.f32 0.70710677, %v372_v20  ;;  %v437_v30 = vmul.f32 0.70710677, %v373_v22  ;;  %v422_v34 = vmul.f32 0.70710677, %v358_v23  ;;  %v375_v37 = vadd.f32 %v1179_v3, %v336_v25 }
  0x15   : > { %1045 = verf.f32 %v420_v26  ;;  %v423_v35 = vmul.f32 0.70710677, %v359_v24  ;;  %v321_v38 = vmul.f32 %v1168_v2, %v282_v28  ;;  %v322_v39 = vmul.f32 %v1168_v2, %v283_v31  ;;  %v286_v0 = vld [vmem:[%s1174_s7 + $0x40] sm:$0xff]  ;;  %v287_v6 = vld [vmem:[%s1174_s7 + $0x48] sm:$0xff] }
  0x16   : > { %1047 = verf.f32 %v421_v27  ;;  %v337_v41 = vmul.f32 %v1168_v2, %v298_v32  ;;  %v1215_v43 = vmul.f32 0.5, %v357_v19  ;;  %v1217_v44 = vmul.f32 0.5, %v372_v20  ;;  %v302_v21 = vld [vmem:[%s1174_s7 + $0xc0] sm:$0xff] }
  0x17   : > { %1049 = verf.f32 %v436_v29  ;;  %v438_v45 = vmul.f32 0.70710677, %v374_v36  ;;  %v439_v46 = vmul.f32 0.70710677, %v375_v37  ;;  %v360_v47 = vadd.f32 %v1179_v3, %v321_v38 }
  0x18   : > { %1051 = verf.f32 %v437_v30  ;;  %v361_v48 = vadd.f32 %v1179_v3, %v322_v39  ;;  %v338_v49 = vmul.f32 %v1168_v2, %v299_v40  ;;  %v376_v50 = vadd.f32 %v1179_v3, %v337_v41  ;;  %v303_v30 = vld [vmem:[%s1174_s7 + $0xc8] sm:$0xff] }
  0x19   : > { %1053 = verf.f32 %v422_v34  ;;  %v323_v52 = vmul.f32 %v1168_v2, %v284_v42  ;;  %v1225_v53 = vmul.f32 0.5, %v373_v22  ;;  %v1227_v54 = vmul.f32 0.5, %v358_v23 }
  0x1a   : > { %1055 = verf.f32 %v423_v35  ;;  %v424_v55 = vmul.f32 0.70710677, %v360_v47  ;;  %v1230_v57 = vmul.f32 0.5, %v359_v24  ;;  %v425_v58 = vmul.f32 0.70710677, %v361_v48 }
  0x1b   : > { %1057 = verf.f32 %v438_v45  ;;  %v377_v59 = vadd.f32 %v1179_v3, %v338_v49  ;;  %v440_v60 = vmul.f32 0.70710677, %v376_v50  ;;  %v324_v61 = vmul.f32 %v1168_v2, %v285_v51 }
  0x1c   : > { %1059 = verf.f32 %v439_v46  ;;  %v362_v62 = vadd.f32 %v1179_v3, %v323_v52  ;;  %v1237_v1 = vmul.f32 0.5, %v374_v36  ;;  %v339_v5 = vmul.f32 %v1168_v2, %v300_v56 }
  0x1d   : > { %1061 = verf.f32 %v424_v55  ;;  %v441_v4 = vmul.f32 0.70710677, %v377_v59  ;;  %v1241_v7 = vmul.f32 0.5, %v375_v37  ;;  %v363_v8 = vadd.f32 %v1179_v3, %v324_v61 }
  0x1e   : > { %1063 = verf.f32 %v425_v58  ;;  %v426_v9 = vmul.f32 0.70710677, %v362_v62  ;;  %v340_v10 = vmul.f32 %v1168_v2, %v301_v63  ;;  %v1246_v11 = vadd.f32 %v1179_v3, %v339_v5 }
  0x1f   : > { %1065 = verf.f32 %v440_v60  ;;  %v325_v12 = vmul.f32 %v1168_v2, %v286_v0  ;;  %v1249_v13 = vmul.f32 0.5, %v360_v47  ;;  %v427_v14 = vmul.f32 0.70710677, %v363_v8  ;;  %v288_v0 = vld [vmem:[%s1174_s7 + $0x50] sm:$0xff] }
  0x20   : > { %1067 = verf.f32 %v441_v4  ;;  %v326_v15 = vmul.f32 %v1168_v2, %v287_v6  ;;  %v1252_v17 = vmul.f32 0.5, %v361_v48  ;;  %v1255_v18 = vadd.f32 %v1179_v3, %v340_v10  ;;  %v289_v10 = vld [vmem:[%s1174_s7 + $0x58] sm:$0xff] }
  0x21   : > { %1069 = verf.f32 %v426_v9  ;;  %v442_v19 = vmul.f32 0.70710677, %v1246_v11  ;;  %v1259_v20 = vadd.f32 %v1179_v3, %v325_v12  ;;  %v1262_v24 = vmul.f32 0.5, %v376_v50 }
  0x22   : > { %v1046_v16 = vpop.eup %1045  ;;  %1071 = verf.f32 %v427_v14  ;;  %v1265_v25 = vadd.f32 %v1179_v3, %v326_v15  ;;  %v1267_v28 = vmul.f32 0.5, %v377_v59  ;;  %v443_v29 = vmul.f32 0.70710677, %v1255_v18  ;;  %v304_v15 = vld [vmem:[%s1174_s7 + $0xd0] sm:$0xff] }
  0x23   : > { %v1048_v22 = vpop.eup %1047  ;;  %v484_v23 = vadd.f32 1.0, %v1046_v16  ;;  %1073 = verf.f32 %v442_v19  ;;  %v1272_v35 = vmul.f32 0.5, %v362_v62  ;;  %v341_v36 = vmul.f32 %v1168_v2, %v302_v21 }
  0x24   : > { %v1050_v26 = vpop.eup %1049  ;;  %v485_v27 = vadd.f32 1.0, %v1048_v22  ;;  %1075 = verf.f32 %v443_v29  ;;  %v428_v40 = vmul.f32 0.70710677, %v1259_v20  ;;  %v429_v46 = vmul.f32 0.70710677, %v1265_v25 }
  0x25   : > { %v1052_v31 = vpop.eup %1051  ;;  %v516_v32 = vmul.f32 %v484_v23, %v1206_v33  ;;  %v500_v34 = vadd.f32 1.0, %v1050_v26  ;;  %v342_v33 = vmul.f32 %v1168_v2, %v303_v30  ;;  %v1283_v55 = vadd.f32 %v1179_v3, %v341_v36  ;;  %v305_v23 = vld [vmem:[%s1174_s7 + $0xd8] sm:$0xff] }
  0x26   : > { %v1054_v37 = vpop.eup %1053  ;;  %v517_v38 = vmul.f32 %v485_v27, %v1215_v43  ;;  %v501_v39 = vadd.f32 1.0, %v1052_v31  ;;  %1077 = verf.f32 %v428_v40  ;;  %v395_v62 = vmul.f32 0.5, %v363_v8 }
  0x27   : > { %v1056_v41 = vpop.eup %1055  ;;  %v532_v42 = vmul.f32 %v500_v34, %v1217_v44  ;;  %v486_v45 = vadd.f32 1.0, %v1054_v37  ;;  %1079 = verf.f32 %v429_v46  ;;  %v444_v63 = vmul.f32 0.70710677, %v1283_v55 }
  0x28   : > { %v1058_v47 = vpop.eup %1057  ;;  %v548_v48 = vpack.c.bf16 %v517_v38, %v516_v32  ;;  %v533_v49 = vmul.f32 %v501_v39, %v1225_v53  ;;  %v487_v50 = vadd.f32 1.0, %v1056_v41  ;;  %v1288_v53 = vadd.f32 %v1179_v3, %v342_v33 }
  0x29   : > { %v1060_v51 = vpop.eup %1059  ;;  %v518_v43 = vmul.f32 %v486_v45, %v1227_v54  ;;  %v502_v52 = vadd.f32 1.0, %v1058_v47  ;;  %v410_v9 = vmul.f32 0.5, %v1246_v11  ;;  %1081 = verf.f32 %v444_v63  ;;  %v292_v63 = vld [vmem:[%s1174_s7 + $0x70] sm:$0xff] }
  0x2a   : > { %v1062_v44 = vpop.eup %1061  ;;  %1001 = vmatprep.mubr.msk.bf16.mxu0 %vm572_vm1, %v548_v48  ;;  %v556_v56 = vpack.c.bf16 %v533_v49, %v532_v42  ;;  %v519_v58 = vmul.f32 %v487_v50, %v1230_v57  ;;  %v503_v59 = vadd.f32 1.0, %v1060_v51  ;;  %v445_v8 = vmul.f32 0.70710677, %v1288_v53  ;;  %v290_v48 = vld [vmem:[%s1174_s7 + $0x60] sm:$0xff]  ;;  %v291_v49 = vld [vmem:[%s1174_s7 + $0x68] sm:$0xff] }
  0x2b   : > { %v1064_v60 = vpop.eup %1063  ;;  %v534_v61 = vmul.f32 %v502_v52, %v1237_v1  ;;  %v488_v54 = vadd.f32 1.0, %v1062_v44  ;;  %v327_v22 = vmul.f32 %v1168_v2, %v288_v0  ;;  %v344_v37 = vmul.f32 %v1168_v2, %v305_v23  ;;  %v306_v52 = vld [vmem:[%s1174_s7 + $0xe0] sm:$0xff]  ;;  %v293_v0 = vld [vmem:[%s1174_s7 + $0x78] sm:$0xff] }
  0x2c   : > { %v1066_v4 = vpop.eup %1065  ;;  %1017 = vmatprep.mubr.msk.bf16.mxu1 %vm572_vm1, %v556_v56  ;;  %v549_v5 = vpack.c.bf16 %v519_v58, %v518_v43  ;;  %v535_v6 = vmul.f32 %v503_v59, %v1241_v7  ;;  %v489_v57 = vadd.f32 1.0, %v1064_v60  ;;  %1083 = verf.f32 %v445_v8 }
  0x2d   : > { %v1068_v12 = vpop.eup %1067  ;;  %v520_v1 = vmul.f32 %v488_v54, %v1249_v13  ;;  %v504_v14 = vadd.f32 1.0, %v1066_v4  ;;  %v328_v13 = vmul.f32 %v1168_v2, %v289_v10  ;;  %v1309_v31 = vadd.f32 %v1179_v3, %v327_v22 }
  0x2e   : > { %v1070_v16 = vpop.eup %1069  ;;  %1002 = vmatmul.mubr.msk.bf16.vlgmr.msra.gmra.mxu0 %vm572_vm1, %v549_v5  ;;  %v557_v19 = vpack.c.bf16 %v535_v6, %v534_v61  ;;  %v521_v21 = vmul.f32 %v489_v57, %v1252_v17  ;;  %v505_v7 = vadd.f32 1.0, %v1068_v12  ;;  %v343_v17 = vmul.f32 %v1168_v2, %v304_v15  ;;  %v307_v61 = vld [vmem:[%s1174_s7 + $0xe8] sm:$0xff]  ;;  %v308_v12 = vld [vmem:[%s1174_s7 + $0xf0] sm:$0xff] }
  0x2f   : > { %v536_v11 = vmul.f32 %v504_v14, %v1262_v24  ;;  %v490_v26 = vadd.f32 1.0, %v1070_v16  ;;  %v1072_v27 = vpop.eup %1071  ;;  %v1314_v24 = vadd.f32 %v1179_v3, %v328_v13  ;;  %v430_v40 = vmul.f32 0.70710677, %v1309_v31 }
  0x30   : > { %1018 = vmatmul.mubr.msk.bf16.vlgmr.msra.gmra.mxu1 %vm572_vm1, %v557_v19  ;;  %v550_v29 = vpack.c.bf16 %v521_v21, %v520_v1  ;;  %v537_v30 = vmul.f32 %v505_v7, %v1267_v28  ;;  %v1074_v32 = vpop.eup %1073  ;;  %v491_v34 = vadd.f32 1.0, %v1072_v27  ;;  %v411_v28 = vmul.f32 0.5, %v1255_v18 }
  0x31   : > { %v522_v36 = vmul.f32 %v490_v26, %v1272_v35  ;;  %v506_v39 = vadd.f32 1.0, %v1074_v32  ;;  %v1076_v41 = vpop.eup %1075  ;;  %v396_v35 = vmul.f32 0.5, %v1259_v20  ;;  %v431_v45 = vmul.f32 0.70710677, %v1314_v24 }
  0x32   : > { %1005 = vmatprep.mubr.msk.bf16.mxu0 %vm572_vm1, %v550_v29  ;;  %v558_v38 = vpack.c.bf16 %v537_v30, %v536_v11  ;;  %v523_v42 = vmul.f32 %v491_v34, %v395_v62  ;;  %v1323_v46 = vadd.f32 %v1179_v3, %v343_v17  ;;  %v507_v33 = vadd.f32 1.0, %v1076_v41  ;;  %v309_v17 = vld [vmem:[%s1174_s7 + $0xf8] sm:$0xff] }
  0x33   : > { %v538_v47 = vmul.f32 %v506_v39, %v410_v9  ;;  %1085 = verf.f32 %v430_v40  ;;  %v1327_v18 = vadd.f32 %v1179_v3, %v344_v37  ;;  %v1078_v50 = vpop.eup %1077  ;;  %v397_v20 = vmul.f32 0.5, %v1265_v25 }
  0x34   : > { %1021 = vmatprep.mubr.msk.bf16.mxu1 %vm572_vm1, %v558_v38  ;;  %v551_v51 = vpack.c.bf16 %v523_v42, %v522_v36  ;;  %1087 = verf.f32 %v431_v45  ;;  %v446_v43 = vmul.f32 0.70710677, %v1323_v46  ;;  %v1080_v44 = vpop.eup %1079  ;;  %v539_v56 = vmul.f32 %v507_v33, %v411_v28 }
  0x35   : > { %v492_v58 = vadd.f32 1.0, %v1078_v50  ;;  %v412_v59 = vmul.f32 0.5, %v1283_v55  ;;  %v447_v60 = vmul.f32 0.70710677, %v1327_v18  ;;  %v493_v54 = vadd.f32 1.0, %v1080_v44 }
  0x36   : > { %1006 = vmatmul.mubr.msk.bf16.gmra.mxu0 %vm572_vm1, %v551_v51  ;;  %1089 = verf.f32 %v446_v43  ;;  %v329_v25 = vmul.f32 %v1168_v2, %v290_v48  ;;  %v330_v62 = vmul.f32 %v1168_v2, %v291_v49  ;;  %v559_v4 = vpack.c.bf16 %v539_v56, %v538_v47  ;;  %v1082_v1 = vpop.eup %1081 }
  0x37   : > { %v524_v5 = vmul.f32 %v492_v58, %v396_v35  ;;  %1091 = verf.f32 %v447_v60  ;;  %v345_v6 = vmul.f32 %v1168_v2, %v306_v52  ;;  %v525_v55 = vmul.f32 %v493_v54, %v397_v20 }
  0x38   : > { %v368_v57 = vadd.f32 %v1179_v3, %v329_v25  ;;  %v369_v9 = vadd.f32 %v1179_v3, %v330_v62  ;;  %v346_v10 = vmul.f32 %v1168_v2, %v307_v61  ;;  %1022 = vmatmul.mubr.msk.bf16.gmra.mxu1 %vm572_vm1, %v559_v4  ;;  %v331_v8 = vmul.f32 %v1168_v2, %v292_v63 }
  0x39   : > { %v384_v14 = vadd.f32 %v1179_v3, %v345_v6  ;;  %v332_v15 = vmul.f32 %v1168_v2, %v293_v0  ;;  %v552_v16 = vpack.c.bf16 %v525_v55, %v524_v5  ;;  %v413_v19 = vmul.f32 0.5, %v1288_v53  ;;  %v1084_v7 = vpop.eup %1083 }
  0x3a   : > { %v508_v21 = vadd.f32 1.0, %v1082_v1  ;;  %v432_v22 = vmul.f32 0.70710677, %v368_v57  ;;  %v433_v23 = vmul.f32 0.70710677, %v369_v9  ;;  %v385_v11 = vadd.f32 %v1179_v3, %v346_v10 }
  0x3b   : > { %v347_v26 = vmul.f32 %v1168_v2, %v308_v12  ;;  %1009 = vmatprep.mubr.msk.bf16.mxu0 %vm572_vm1, %v552_v16  ;;  %v509_v13 = vadd.f32 1.0, %v1084_v7  ;;  %v448_v29 = vmul.f32 0.70710677, %v384_v14  ;;  %v370_v30 = vadd.f32 %v1179_v3, %v331_v8 }
  0x3c   : > { %v540_v27 = vmul.f32 %v508_v21, %v412_v59  ;;  %1093 = verf.f32 %v432_v22  ;;  %v449_v32 = vmul.f32 0.70710677, %v385_v11  ;;  %v371_v53 = vadd.f32 %v1179_v3, %v332_v15 }
  0x3d   : > { %v541_v34 = vmul.f32 %v509_v13, %v413_v19  ;;  %1095 = verf.f32 %v433_v23  ;;  %v434_v36 = vmul.f32 0.70710677, %v370_v30  ;;  %v398_v37 = vmul.f32 0.5, %v1309_v31 }
  0x3e   : > { %1097 = verf.f32 %v448_v29  ;;  %v435_v38 = vmul.f32 0.70710677, %v371_v53  ;;  %v348_v28 = vmul.f32 %v1168_v2, %v309_v17  ;;  %v399_v41 = vmul.f32 0.5, %v1314_v24 }
  0x3f   : > { %v560_v40 = vpack.c.bf16 %v541_v34, %v540_v27  ;;  %1099 = verf.f32 %v449_v32  ;;  %v386_v42 = vadd.f32 %v1179_v3, %v347_v26  ;;  %v414_v31 = vmul.f32 0.5, %v1323_v46  ;;  %v788_v34 = vld [vmem:[%s1376_s12 + $0x10] sm:$0xff] }
  0x40   : > { %v1086_v39 = vpop.eup %1085  ;;  %1101 = verf.f32 %v434_v36  ;;  %v387_v33 = vadd.f32 %v1179_v3, %v348_v28  ;;  %v415_v50 = vmul.f32 0.5, %v1327_v18  ;;  %v400_v46 = vmul.f32 0.5, %v368_v57  ;;  %v802_v28 = vld [vmem:[%s1376_s12 + $0x80] sm:$0xff] }
  0x41   : > { %v1088_v35 = vpop.eup %1087  ;;  %v494_v45 = vadd.f32 1.0, %v1086_v39  ;;  %1025 = vmatprep.mubr.msk.bf16.mxu1 %vm572_vm1, %v560_v40  ;;  %1103 = verf.f32 %v435_v38  ;;  %v450_v48 = vmul.f32 0.70710677, %v386_v42  ;;  %v401_v60 = vmul.f32 0.5, %v369_v9  ;;  %v786_v38 = vld [vmem:[%s1376_s12] sm:$0xff]  ;;  %v789_v39 = vld [vmem:[%s1376_s12 + $0x18] sm:$0xff] }
  0x42   : > { %v495_v47 = vadd.f32 1.0, %v1088_v35  ;;  %v451_v24 = vmul.f32 0.70710677, %v387_v33  ;;  %v416_v54 = vmul.f32 0.5, %v384_v14  ;;  %v417_v63 = vmul.f32 0.5, %v385_v11  ;;  %v805_v40 = vld [vmem:[%s1376_s12 + $0x98] sm:$0xff] }
  0x43   : > { %v1090_v2 = vpop.eup %1089  ;;  %v526_v49 = vmul.f32 %v494_v45, %v398_v37  ;;  %1105 = verf.f32 %v450_v48  ;;  %v402_v6 = vmul.f32 0.5, %v370_v30  ;;  %v403_v1 = vmul.f32 0.5, %v371_v53  ;;  %v1381_v53 = vld [vmem:[%s1591_s5] ss:$0 sm:$0xff]  ;;  %v804_v37 = vld [vmem:[%s1376_s12 + $0x90] sm:$0xff]  ;;  %v1403_v48 = vld [vmem:[%s1376_s12 + $0xb8] sm:$0xff] }
  0x44   : > { %v1092_v51 = vpop.eup %1091  ;;  %v527_v20 = vmul.f32 %v495_v47, %v399_v41  ;;  %v510_v43 = vadd.f32 1.0, %v1090_v2  ;;  %1107 = verf.f32 %v451_v24  ;;  %v418_v21 = vmul.f32 0.5, %v386_v42  ;;  %v787_v41 = vld [vmem:[%s1376_s12 + $0x8] sm:$0xff]  ;;  %v792_v35 = vld [vmem:[%s1376_s12 + $0x30] sm:$0xff]  ;;  %v1397_v47 = vld [vmem:[%s1376_s12 + $0xa0] sm:$0xff] }
  0x45   : > { %v511_v52 = vadd.f32 1.0, %v1092_v51  ;;  %v419_v22 = vmul.f32 0.5, %v387_v33  ;;  %v803_v42 = vld [vmem:[%s1376_s12 + $0x88] sm:$0xff]  ;;  %v1393_v45 = vld [vmem:[%s1376_s12 + $0xb0] sm:$0xff]  ;;  %v790_v33 = vld [vmem:[%s1376_s12 + $0x20] sm:$0xff] }
  0x46   : > { %v553_v44 = vpack.c.bf16 %v527_v20, %v526_v49  ;;  %v542_v3 = vmul.f32 %v510_v43, %v414_v31  ;;  %v1400_v31 = vld [vmem:[%s1376_s12 + $0x38] sm:$0xff]  ;;  %v1406_v2 = vld [vmem:[%s1376_s12 + $0x28] sm:$0xff]  ;;  %v1415_v24 = vld [vmem:[%s1376_s12 + $0xd0] sm:$0xff] }
  0x47   : > { %v543_v56 = vmul.f32 %v511_v52, %v415_v50  ;;  %v1409_v49 = vld [vmem:[%s1376_s12 + $0xa8] sm:$0xff]  ;;  %v1412_v50 = vld [vmem:[%s1376_s12 + $0x50] sm:$0xff]  ;;  %v1418_v51 = vld [vmem:[%s1376_s12 + $0x40] sm:$0xff] }
  0x48   : > { %1010 = vmatmul.mubr.msk.bf16.gmra.mxu0 %vm572_vm1, %v553_v44  ;;  %v1421_v20 = vld [vmem:[%s1376_s12 + $0xc0] sm:$0xff]  ;;  %v1424_v43 = vld [vmem:[%s1376_s12 + $0x58] sm:$0xff]  ;;  %v1430_v44 = vld [vmem:[%s1376_s12 + $0x48] sm:$0xff] }
  0x49   : > { %v561_v58 = vpack.c.bf16 %v543_v56, %v542_v3  ;;  %v1094_v59 = vpop.eup %1093  ;;  %v1427_v52 = vld [vmem:[%s1376_s12 + $0xd8] sm:$0xff]  ;;  %v1433_v3 = vld [vmem:[%s1376_s12 + $0xc8] sm:$0xff]  ;;  %v1436_v56 = vld [vmem:[%s1376_s12 + $0x70] sm:$0xff] }
  0x4a   : > { %v1096_v61 = vpop.eup %1095  ;;  %v496_v18 = vadd.f32 1.0, %v1094_v59  ;;  %v1443_v59 = vld [vmem:[%s1376_s12 + $0x60] sm:$0xff] }
  0x4b   : > { %1026 = vmatmul.mubr.msk.bf16.gmra.mxu1 %vm572_vm1, %v561_v58  ;;  %v1098_v25 = vpop.eup %1097  ;;  %v497_v62 = vadd.f32 1.0, %v1096_v61  ;;  %v1439_v58 = vld [vmem:[%s1376_s12 + $0xf0] sm:$0xff]  ;;  %v1449_v61 = vld [vmem:[%s1376_s12 + $0x78] sm:$0xff] }
  0x4c   : > { %v1100_v0 = vpop.eup %1099  ;;  %v528_v4 = vmul.f32 %v496_v18, %v400_v46  ;;  %v512_v5 = vadd.f32 1.0, %v1098_v25  ;;  %v1458_v25 = vld [vmem:[%s1376_s12 + $0xf8] sm:$0xff] }
  0x4d   : > { %v1102_v55 = vpop.eup %1101  ;;  %v529_v10 = vmul.f32 %v497_v62, %v401_v60  ;;  %v513_v12 = vadd.f32 1.0, %v1100_v0  ;;  %v1446_v60 = vld [vmem:[%s1376_s12 + $0xe0] sm:$0xff]  ;;  %v1461_v62 = vld [vmem:[%s1376_s12 + $0x68] sm:$0xff] }
  0x4e   : > { %v1104_v8 = vpop.eup %1103  ;;  %v544_v57 = vmul.f32 %v512_v5, %v416_v54  ;;  %v498_v15 = vadd.f32 1.0, %v1102_v55 }
  0x4f   : > { %v554_v9 = vpack.c.bf16 %v529_v10, %v528_v4  ;;  %v545_v16 = vmul.f32 %v513_v12, %v417_v63  ;;  %v499_v19 = vadd.f32 1.0, %v1104_v8  ;;  %v1464_v63 = vld [vmem:[%s1376_s12 + $0xe8] sm:$0xff] }
  0x50   : > { %v1106_v7 = vpop.eup %1105  ;;  %v530_v14 = vmul.f32 %v498_v15, %v402_v6 }
  0x51   : > { %v1108_v23 = vpop.eup %1107  ;;  %1013 = vmatprep.mubr.msk.bf16.mxu0 %vm572_vm1, %v554_v9  ;;  %v562_v11 = vpack.c.bf16 %v545_v16, %v544_v57  ;;  %v531_v26 = vmul.f32 %v499_v19, %v403_v1  ;;  %v514_v13 = vadd.f32 1.0, %v1106_v7 }
  0x52   : > { %v515_v27 = vadd.f32 1.0, %v1108_v23 }
  0x53   : > { %1029 = vmatprep.mubr.msk.bf16.mxu1 %vm572_vm1, %v562_v11  ;;  %v555_v29 = vpack.c.bf16 %v531_v26, %v530_v14  ;;  %v546_v30 = vmul.f32 %v514_v13, %v418_v21 }
  0x54   : > { %v547_v17 = vmul.f32 %v515_v27, %v419_v22 }
  0x55   : > { %1014 = vmatmul.mubr.msk.bf16.gmra.mxu0 %vm572_vm1, %v555_v29 }
  0x56   : > { %v563_v32 = vpack.c.bf16 %v547_v17, %v546_v30 }
  0x58   : > { %1030 = vmatmul.mubr.msk.bf16.gmra.mxu1 %vm572_vm1, %v563_v32 }
  0xee   : > { %v1003_v36 = vpop.f32.mrf.mxu0 }
  0xef   : > { %v668_v46 = vadd.f32 %v1003_v36, %v1381_v53 }
  0xf0   : > { %v1019_v18 = vpop.f32.mrf.mxu1  ;;  %v659_v54 = vpop.f32.mrf.mxu0 }
  0xf1   : > { %v820_v0 = vadd.f32 %v788_v34, %v668_v46  ;;  %v732_v4 = vadd.f32 %v1019_v18, %v1381_v53  ;;  %v660_v5 = vadd.f32 %v1381_v53, %v659_v54 }
  0xf2   : > { %v723_v6 = vpop.f32.mrf.mxu1  ;;  %v1004_v55 = vpop.f32.mrf.mxu0 }
  0xf3   : > { %v836_v10 = vadd.f32 %v804_v37, %v732_v4  ;;  %v818_v12 = vadd.f32 %v786_v38, %v660_v5  ;;  %v724_v1 = vadd.f32 %v1381_v53, %v723_v6  ;;  %v671_v8 = vadd.f32 %v1004_v55, %v1381_v53  ;;  %852 = vst.msk [vmem:[%s1455_s17 + $0x10] sm:$0xff] %vm572_vm1, %v820_v0 }
  0xf4   : > { %v1020_v57 = vpop.f32.mrf.mxu1  ;;  %v662_v15 = vpop.f32.mrf.mxu0 }
  0xf5   : > { %v834_v9 = vadd.f32 %v802_v28, %v724_v1  ;;  %v821_v16 = vadd.f32 %v789_v39, %v671_v8  ;;  %v735_v19 = vadd.f32 %v1020_v57, %v1381_v53  ;;  %v663_v21 = vadd.f32 %v1381_v53, %v662_v15  ;;  %850 = vst.msk [vmem:[%s1455_s17] sm:$0xff] %vm572_vm1, %v818_v12 }
  0xf6   : > { %868 = vst.msk [vmem:[%s1455_s17 + $0x90] sm:$0xff] %vm572_vm1, %v836_v10  ;;  %v726_v7 = vpop.f32.mrf.mxu1  ;;  %v1007_v11 = vpop.f32.mrf.mxu0 }
  0xf7   : > { %v837_v14 = vadd.f32 %v805_v40, %v735_v19  ;;  %v819_v22 = vadd.f32 %v787_v41, %v663_v21  ;;  %v727_v23 = vadd.f32 %v1381_v53, %v726_v7  ;;  %853 = vst.msk [vmem:[%s1455_s17 + $0x18] sm:$0xff] %vm572_vm1, %v821_v16  ;;  %866 = vst.msk [vmem:[%s1455_s17 + $0x80] sm:$0xff] %vm572_vm1, %v834_v9 }
  0xf8   : > { %v684_v26 = vadd.f32 %v1007_v11, %v1381_v53  ;;  %v675_v27 = vpop.f32.mrf.mxu0  ;;  %v1023_v30 = vpop.f32.mrf.mxu1 }
  0xf9   : > { %v835_v13 = vadd.f32 %v803_v42, %v727_v23  ;;  %851 = vst.msk [vmem:[%s1455_s17 + $0x8] sm:$0xff] %vm572_vm1, %v819_v22  ;;  %869 = vst.msk [vmem:[%s1455_s17 + $0x98] sm:$0xff] %vm572_vm1, %v837_v14  ;;  %v676_v17 = vadd.f32 %v1381_v53, %v675_v27  ;;  %v748_v32 = vadd.f32 %v1023_v30, %v1381_v53 }
  0xfa   : > { %v824_v29 = vadd.f32 %v792_v35, %v684_v26  ;;  %v1008_v34 = vpop.f32.mrf.mxu0  ;;  %v739_v37 = vpop.f32.mrf.mxu1 }
  0xfb   : > { %867 = vst.msk [vmem:[%s1455_s17 + $0x88] sm:$0xff] %vm572_vm1, %v835_v13  ;;  %v822_v36 = vadd.f32 %v790_v33, %v676_v17  ;;  %v687_v38 = vadd.f32 %v1008_v34, %v1381_v53  ;;  %v840_v28 = vadd.f32 %v1393_v45, %v748_v32  ;;  %v740_v39 = vadd.f32 %v1381_v53, %v739_v37 }
  0xfc   : > { %856 = vst.msk [vmem:[%s1455_s17 + $0x30] sm:$0xff] %vm572_vm1, %v824_v29  ;;  %v678_v40 = vpop.f32.mrf.mxu0  ;;  %v1024_v42 = vpop.f32.mrf.mxu1 }
  0xfd   : > { %v825_v41 = vadd.f32 %v1400_v31, %v687_v38  ;;  %v679_v35 = vadd.f32 %v1381_v53, %v678_v40  ;;  %854 = vst.msk [vmem:[%s1455_s17 + $0x20] sm:$0xff] %vm572_vm1, %v822_v36  ;;  %v838_v33 = vadd.f32 %v1397_v47, %v740_v39  ;;  %v751_v46 = vadd.f32 %v1024_v42, %v1381_v53 }
  0xfe   : > { %872 = vst.msk [vmem:[%s1455_s17 + $0xb0] sm:$0xff] %vm572_vm1, %v840_v28  ;;  %v742_v18 = vpop.f32.mrf.mxu1 }
  0xff   : > { %v823_v45 = vadd.f32 %v1406_v2, %v679_v35  ;;  %857 = vst.msk [vmem:[%s1455_s17 + $0x38] sm:$0xff] %vm572_vm1, %v825_v41  ;;  %v841_v54 = vadd.f32 %v1403_v48, %v751_v46  ;;  %v743_v31 = vadd.f32 %v1381_v53, %v742_v18  ;;  %870 = vst.msk [vmem:[%s1455_s17 + $0xa0] sm:$0xff] %vm572_vm1, %v838_v33 }
 0x101   : > { %855 = vst.msk [vmem:[%s1455_s17 + $0x28] sm:$0xff] %vm572_vm1, %v823_v45  ;;  %v839_v47 = vadd.f32 %v1409_v49, %v743_v31  ;;  %873 = vst.msk [vmem:[%s1455_s17 + $0xb8] sm:$0xff] %vm572_vm1, %v841_v54 }
 0x103   : > { %871 = vst.msk [vmem:[%s1455_s17 + $0xa8] sm:$0xff] %vm572_vm1, %v839_v47 }
 0x108   : > { %v1011_v0 = vpop.f32.mrf.mxu0 }
 0x109   : > { %v700_v2 = vadd.f32 %v1011_v0, %v1381_v53 }
 0x10a   : > { %v691_v4 = vpop.f32.mrf.mxu0 }
 0x10b   : > { %v828_v48 = vadd.f32 %v1412_v50, %v700_v2  ;;  %v1027_v5 = vpop.f32.mrf.mxu1  ;;  %v692_v6 = vadd.f32 %v1381_v53, %v691_v4 }
 0x10c   : > { %v764_v55 = vadd.f32 %v1027_v5, %v1381_v53  ;;  %v1012_v10 = vpop.f32.mrf.mxu0 }
 0x10d   : > { %v826_v49 = vadd.f32 %v1418_v51, %v692_v6  ;;  %v755_v12 = vpop.f32.mrf.mxu1  ;;  %v703_v1 = vadd.f32 %v1012_v10, %v1381_v53  ;;  %860 = vst.msk [vmem:[%s1455_s17 + $0x50] sm:$0xff] %vm572_vm1, %v828_v48 }
 0x10e   : > { %v844_v8 = vadd.f32 %v1415_v24, %v764_v55  ;;  %v756_v50 = vadd.f32 %v1381_v53, %v755_v12  ;;  %v694_v57 = vpop.f32.mrf.mxu0 }
 0x10f   : > { %v829_v15 = vadd.f32 %v1424_v43, %v703_v1  ;;  %v1028_v9 = vpop.f32.mrf.mxu1  ;;  %v695_v51 = vadd.f32 %v1381_v53, %v694_v57  ;;  %858 = vst.msk [vmem:[%s1455_s17 + $0x40] sm:$0xff] %vm572_vm1, %v826_v49 }
 0x110   : > { %v842_v16 = vadd.f32 %v1421_v20, %v756_v50  ;;  %v767_v19 = vadd.f32 %v1028_v9, %v1381_v53  ;;  %876 = vst.msk [vmem:[%s1455_s17 + $0xd0] sm:$0xff] %vm572_vm1, %v844_v8 }
 0x111   : > { %v827_v24 = vadd.f32 %v1430_v44, %v695_v51  ;;  %v758_v21 = vpop.f32.mrf.mxu1  ;;  %861 = vst.msk [vmem:[%s1455_s17 + $0x58] sm:$0xff] %vm572_vm1, %v829_v15 }
 0x112   : > { %v845_v7 = vadd.f32 %v1427_v52, %v767_v19  ;;  %v759_v43 = vadd.f32 %v1381_v53, %v758_v21  ;;  %874 = vst.msk [vmem:[%s1455_s17 + $0xc0] sm:$0xff] %vm572_vm1, %v842_v16 }
 0x113   : > { %859 = vst.msk [vmem:[%s1455_s17 + $0x48] sm:$0xff] %vm572_vm1, %v827_v24 }
 0x114   : > { %v843_v20 = vadd.f32 %v1433_v3, %v759_v43  ;;  %877 = vst.msk [vmem:[%s1455_s17 + $0xd8] sm:$0xff] %vm572_vm1, %v845_v7 }
 0x115   : > { %v1015_v14 = vpop.f32.mrf.mxu0 }
 0x116   : > { %875 = vst.msk [vmem:[%s1455_s17 + $0xc8] sm:$0xff] %vm572_vm1, %v843_v20  ;;  %v716_v44 = vadd.f32 %v1015_v14, %v1381_v53 }
 0x117   : > { %v707_v22 = vpop.f32.mrf.mxu0 }
 0x118   : > { %v832_v52 = vadd.f32 %v1436_v56, %v716_v44  ;;  %v1031_v23 = vpop.f32.mrf.mxu1  ;;  %v708_v11 = vadd.f32 %v1381_v53, %v707_v22 }
 0x119   : > { %v780_v26 = vadd.f32 %v1031_v23, %v1381_v53  ;;  %v1016_v13 = vpop.f32.mrf.mxu0 }
 0x11a   : > { %v830_v3 = vadd.f32 %v1443_v59, %v708_v11  ;;  %v771_v27 = vpop.f32.mrf.mxu1  ;;  %v719_v29 = vadd.f32 %v1016_v13, %v1381_v53  ;;  %864 = vst.msk [vmem:[%s1455_s17 + $0x70] sm:$0xff] %vm572_vm1, %v832_v52 }
 0x11b   : > { %v848_v30 = vadd.f32 %v1439_v58, %v780_v26  ;;  %v772_v56 = vadd.f32 %v1381_v53, %v771_v27  ;;  %v710_v17 = vpop.f32.mrf.mxu0 }
 0x11c   : > { %v833_v32 = vadd.f32 %v1449_v61, %v719_v29  ;;  %v1032_v34 = vpop.f32.mrf.mxu1  ;;  %v711_v59 = vadd.f32 %v1381_v53, %v710_v17  ;;  %862 = vst.msk [vmem:[%s1455_s17 + $0x60] sm:$0xff] %vm572_vm1, %v830_v3 }
 0x11d   : > { %v846_v36 = vadd.f32 %v1446_v60, %v772_v56  ;;  %v783_v37 = vadd.f32 %v1032_v34, %v1381_v53  ;;  %880 = vst.msk [vmem:[%s1455_s17 + $0xf0] sm:$0xff] %vm572_vm1, %v848_v30 }
 0x11e   : > { %v831_v58 = vadd.f32 %v1461_v62, %v711_v59  ;;  %v774_v38 = vpop.f32.mrf.mxu1  ;;  %865 = vst.msk [vmem:[%s1455_s17 + $0x78] sm:$0xff] %vm572_vm1, %v833_v32 }
 0x11f   : > { %v849_v28 = vadd.f32 %v1458_v25, %v783_v37  ;;  %v775_v61 = vadd.f32 %v1381_v53, %v774_v38  ;;  %878 = vst.msk [vmem:[%s1455_s17 + $0xe0] sm:$0xff] %vm572_vm1, %v846_v36 }
 0x120   : > { %863 = vst.msk [vmem:[%s1455_s17 + $0x68] sm:$0xff] %vm572_vm1, %v831_v58 }
 0x121   : > { %v847_v39 = vadd.f32 %v1464_v63, %v775_v61  ;;  %881 = vst.msk [vmem:[%s1455_s17 + $0xf8] sm:$0xff] %vm572_vm1, %v849_v28 }
 0x123   : > { %879 = vst.msk [vmem:[%s1455_s17 + $0xe8] sm:$0xff] %vm572_vm1, %v847_v39 }
 0x124 PF: > { %s16_s21 = sadd.s32 1, %s1115_s21  }
 0x125   : > { %p13_p4 = scmp.ge.s32.totalorder %s16_s21, 4  }
 0x127   :  { %15 = sbr.rel (!%p13_p4) target bundleno = 1 (0x1), region = 77 }

</bundles_post_ra>
